<compile_context>
chip_gen: v7x
topology: tpu7x:2x2x1
jax: 0.10.0
libtpu: 0.0.40
codegen_flags: <defaults>
</compile_context>

<pallas_src>
import math
import functools

import jax
import jax.numpy as jnp
from jax.experimental import pallas as pl
from jax.experimental.pallas import tpu as pltpu


def _round_up(a, b):
    return (a + b - 1) // b * b


# ---------------------------------------------------------------------------
# Tiled linear:  y = x @ w.T   with w in PyTorch (out_features, in_features)
# ---------------------------------------------------------------------------

def _linear_resident_kernel(x_ref, wt_ref, o_ref):
    o_ref[...] = jnp.dot(x_ref[...], wt_ref[...],
                         preferred_element_type=jnp.float32).astype(o_ref.dtype)


def _linear_tiled_kernel(x_ref, wt_ref, o_ref, acc_ref):
    @pl.when(pl.program_id(2) == 0)
    def _():
        acc_ref[...] = jnp.zeros_like(acc_ref)

    acc_ref[...] += jnp.dot(x_ref[...], wt_ref[...],
                            preferred_element_type=jnp.float32)

    @pl.when(pl.program_id(2) == pl.num_programs(2) - 1)
    def _():
        o_ref[...] = acc_ref[...].astype(o_ref.dtype)


_W_RESIDENT_BYTES = 4 * 1024 * 1024   # weights <= 4 MiB stay fully VMEM-resident


def _vmem_limit(est_bytes):
    return int(min(64 * 1024 * 1024, max(16 * 1024 * 1024, 2 * est_bytes)))


def pallas_linear(x, w):
    """PyTorch nn.Linear(bias=False): y = x @ w.T ; x: (N, Hin), w: (Hout, Hin)."""
    n, h_in = x.shape
    h_out, h_in2 = w.shape
    assert h_in == h_in2
    # One wrapper-side transpose (amortised over all row tiles / calls) so the
    # kernel contracts ((1,), (0,)) with no per-step RHS relayout.
    wt = w.T

    tm = min(256, _round_up(n, 8))
    n_pad = _round_up(n, tm)
    xp = jnp.pad(x, ((0, n_pad - n), (0, 0))) if n_pad != n else x
    itemsize = x.dtype.itemsize
    cost = pl.CostEstimate(
        flops=int(2 * n_pad * h_out * h_in),
        transcendentals=0,
        bytes_accessed=int((xp.size + wt.size + n_pad * h_out) * itemsize))

    if h_in * h_out * itemsize <= _W_RESIDENT_BYTES:
        # Whole weight resident in VMEM (constant index map -> fetched once and
        # reused for every row tile of x).
        est = itemsize * (2 * tm * h_in + 2 * h_in * h_out + 3 * tm * h_out)
        out = pl.pallas_call(
            _linear_resident_kernel,
            out_shape=jax.ShapeDtypeStruct((n_pad, h_out), x.dtype),
            grid=(n_pad // tm,),
            in_specs=[pl.BlockSpec((tm, h_in), lambda i: (i, 0)),
                      pl.BlockSpec((h_in, h_out), lambda i: (0, 0))],
            out_specs=pl.BlockSpec((tm, h_out), lambda i: (i, 0)),
            compiler_params=pltpu.CompilerParams(
                dimension_semantics=("parallel",),
                vmem_limit_bytes=_vmem_limit(est)),
            cost_estimate=cost,
        )(xp, wt)
        return out[:n]

    # Large weights: classic tiled matmul with an f32 VMEM accumulator; all
    # dims padded so no divisibility fallback can hand back a runaway tile.
    tn = min(512, _round_up(h_out, 128))
    tk = min(512, _round_up(h_in, 128))
    ho_pad = _round_up(h_out, tn)
    hi_pad = _round_up(h_in, tk)
    if hi_pad != h_in:
        xp = jnp.pad(xp, ((0, 0), (0, hi_pad - h_in)))
    wtp = jnp.pad(wt, ((0, hi_pad - h_in), (0, ho_pad - h_out)))
    est = itemsize * (2 * tm * tk + 2 * tk * tn + 2 * tm * tn) + 4 * tm * tn
    out = pl.pallas_call(
        _linear_tiled_kernel,
        out_shape=jax.ShapeDtypeStruct((n_pad, ho_pad), x.dtype),
        grid=(n_pad // tm, ho_pad // tn, hi_pad // tk),
        in_specs=[pl.BlockSpec((tm, tk), lambda i, j, kk: (i, kk)),
                  pl.BlockSpec((tk, tn), lambda i, j, kk: (kk, j))],
        out_specs=pl.BlockSpec((tm, tn), lambda i, j, kk: (i, j)),
        scratch_shapes=[pltpu.VMEM((tm, tn), jnp.float32)],
        compiler_params=pltpu.CompilerParams(
            dimension_semantics=("parallel", "parallel", "arbitrary"),
            vmem_limit_bytes=_vmem_limit(est)),
        cost_estimate=cost,
    )(xp, wtp)
    return out[:n, :h_out]


# ---------------------------------------------------------------------------
# Banded multi-head attention kernel (one grid step = one (batch, q-tile))
# ---------------------------------------------------------------------------

def _local_attn_kernel(q_ref, kc_ref, kt_ref, vc_ref, vt_ref, pos_ref, o_ref, *,
                       num_heads, head_dim, span, q_tile, span_pad):
    """q_ref: (1, TQ, H); kc/vc: (1, TQ, H) current chunk; kt/vt: (1, span_pad, H)
    tail chunk; pos_ref: (D, span); o_ref: (1, TQ, H)."""
    win = q_tile + span_pad

    # Key/value window for this q-tile, assembled from the two streamed blocks.
    k_win = jnp.concatenate([kc_ref[0], kt_ref[0]], axis=0)      # (win, H)
    v_win = jnp.concatenate([vc_ref[0], vt_ref[0]], axis=0)      # (win, H)

    # Band geometry: window column j is valid for row i iff 0 <= j - i < span.
    rows = jax.lax.broadcasted_iota(jnp.int32, (q_tile, win), 0)
    cols = jax.lax.broadcasted_iota(jnp.int32, (q_tile, win), 1)
    rel = cols - rows
    band = (rel >= 0) & (rel < span)

    # Row-index bit masks for the O(log TQ) per-row shift ("skew") below.
    row_col = jax.lax.broadcasted_iota(jnp.int32, (q_tile, 1), 0)
    n_bits = max(1, (q_tile - 1).bit_length())
    bit_masks = [(row_col & (1 << bb)) != 0 for bb in range(n_bits)]

    q_all = q_ref[0]                                              # (TQ, H)
    inv_sqrt_d = 1.0 / math.sqrt(head_dim)
    pos_t = pos_ref[...].astype(q_all.dtype)                      # cast hoisted
    zero_pad = jnp.zeros((q_tile, win - span), jnp.float32)

    for h in range(num_heads):                                    # static unroll
        sl = slice(h * head_dim, (h + 1) * head_dim)
        qh = q_all[:, sl] * inv_sqrt_d                            # pre-scaled (TQ, D)
        kh = k_win[:, sl]                                         # (win, D)
        vh = v_win[:, sl]                                         # (win, D)

        # Content scores on the MXU: (TQ, D) x (win, D)^T -> (TQ, win).
        scores = jax.lax.dot_general(
            qh, kh, dimension_numbers=(((1,), (1,)), ((), ())),
            preferred_element_type=jnp.float32)

        # Positional scores (TQ, span) = q @ pos; place column s on window
        # diagonal s by rotating row i right by i (binary decomposition of the
        # row index -> log2(TQ) static rolls + selects instead of a span-length
        # VPU select loop).  Wrap-around lands in the zero pad / masked region.
        attn_pos = jnp.dot(qh, pos_t, preferred_element_type=jnp.float32)
        pos_full = jnp.concatenate([attn_pos, zero_pad], axis=1)  # (TQ, win)
        for bb in range(n_bits):
            pos_full = jnp.where(bit_masks[bb],
                                 jnp.roll(pos_full, 1 << bb, axis=1),
                                 pos_full)

        # Band-masked, numerically stable softmax (exact normalisation).
        logits = jnp.where(band, scores + pos_full, -1e30)
        logits = logits - jnp.max(logits, axis=-1, keepdims=True)
        p = jnp.exp(logits)
        p = p / jnp.sum(p, axis=-1, keepdims=True)
        # dropout: identity in eval mode.

        # p @ V on the MXU; each head written at its static lane offset of the
        # (1, TQ, H) output block (no lane-axis concatenate of head results).
        o_ref[0, :, sl] = jnp.dot(
            p.astype(vh.dtype), vh,
            preferred_element_type=jnp.float32).astype(o_ref.dtype)


def _attn_tiling(m, span):
    """Span-aware q-tile / window geometry.

    Returns (q_tile, span_pad, m_pad) with span_pad | q_tile (so the window
    tail is addressable with a plain Blocked index map), both multiples of 8,
    and the dense-window waste (q_tile + span_pad) / span kept near its floor
    instead of defaulting to a large q tile."""
    span_pad = _round_up(span, 8)
    sp128 = _round_up(span, 128)
    if sp128 <= span_pad + max(span_pad // 4, 8):   # lane-dense window if cheap
        span_pad = sp128
    if span >= 128:
        target = min(512, _round_up(span, 128))
    else:
        target = 128
    target = min(target, _round_up(m, span_pad))
    q_tile = max(span_pad, (target // span_pad) * span_pad)
    m_pad = _round_up(m, q_tile)
    return q_tile, span_pad, m_pad


def pallas_local_attention(q, k, v, pos, *, num_heads, head_dim, span):
    """q: (B, M, H); k/v: (B, L, H) with L = M + span; pos: (D, span) -> (B, M, H)."""
    b, m, hdim = q.shape
    l = k.shape[1]
    assert l == m + span, "key/value length must be M + attn_span"
    assert hdim == num_heads * head_dim

    q_tile, span_pad, m_pad = _attn_tiling(m, span)
    n_t = m_pad // q_tile
    win = q_tile + span_pad
    l_pad = m_pad + span_pad
    tail_ratio = q_tile // span_pad

    if m_pad != m:
        q = jnp.pad(q, ((0, 0), (0, m_pad - m), (0, 0)))
    if l_pad != l:
        kv_pad = ((0, 0), (0, l_pad - l), (0, 0))
        k = jnp.pad(k, kv_pad)
        v = jnp.pad(v, kv_pad)

    kernel = functools.partial(
        _local_attn_kernel, num_heads=num_heads, head_dim=head_dim,
        span=span, q_tile=q_tile, span_pad=span_pad)

    itemsize = q.dtype.itemsize
    cost = pl.CostEstimate(
        flops=int(2 * b * n_t * num_heads * q_tile * head_dim * (2 * win + span)),
        transcendentals=int(b * n_t * num_heads * q_tile * win),
        bytes_accessed=int((2 * q.size + k.size + v.size + pos.size) * itemsize))

    # Double-buffered q/out/current-K/V tiles + tail blocks + f32 working set;
    # give the compiler an explicit, bounded budget (v7x has only 64 MiB VMEM).
    est = (itemsize * (2 * 4 * q_tile * hdim + 2 * 2 * span_pad * hdim
                       + 2 * head_dim * span)
           + 4 * 8 * q_tile * win)

    out = pl.pallas_call(
        kernel,
        out_shape=jax.ShapeDtypeStruct((b, m_pad, hdim), q.dtype),
        grid=(b, n_t),
        in_specs=[
            pl.BlockSpec((1, q_tile, hdim), lambda bi, ti: (bi, ti, 0)),
            # K/V window = current q_tile chunk + span_pad tail chunk (both are
            # plain Blocked specs -> auto-pipelined, VMEM stays O(window)).
            pl.BlockSpec((1, q_tile, hdim), lambda bi, ti: (bi, ti, 0)),
            pl.BlockSpec((1, span_pad, hdim),
                         lambda bi, ti: (bi, (ti + 1) * tail_ratio, 0)),
            pl.BlockSpec((1, q_tile, hdim), lambda bi, ti: (bi, ti, 0)),
            pl.BlockSpec((1, span_pad, hdim),
                         lambda bi, ti: (bi, (ti + 1) * tail_ratio, 0)),
            pl.BlockSpec((head_dim, span), lambda bi, ti: (0, 0)),
        ],
        out_specs=pl.BlockSpec((1, q_tile, hdim), lambda bi, ti: (bi, ti, 0)),
        compiler_params=pltpu.CompilerParams(
            dimension_semantics=("parallel", "parallel"),
            vmem_limit_bytes=_vmem_limit(est)),
        cost_estimate=cost,
    )(q, k, k, v, v, pos)
    return out[:, :m, :]


# ---------------------------------------------------------------------------
# MultiHeadSeqAttention forward (no head-split transposes in XLA)
# ---------------------------------------------------------------------------

def multi_head_seq_attention(params, query, key, value, pos_encoding,
                             *, num_heads, head_dim, attn_span):
    b, m, h = query.shape
    l = key.shape[1]
    assert l == m + attn_span

    q = pallas_linear(query.reshape(b * m, h), params["wq"]).reshape(b, m, h)
    k = pallas_linear(key.reshape(b * l, h), params["wk"]).reshape(b, l, h)
    v = pallas_linear(value.reshape(b * l, h), params["wv"]).reshape(b, l, h)

    out = pallas_local_attention(q, k, v, pos_encoding,
                                 num_heads=num_heads, head_dim=head_dim,
                                 span=attn_span)                     # (B, M, H)

    out = pallas_linear(out.reshape(b * m, h), params["wo"]).reshape(b, m, h)
    return out


# ---------------------------------------------------------------------------
# Pure-JAX reference (mirrors the PyTorch code, incl. _skew/_unskew semantics)
# ---------------------------------------------------------------------------

def _split_heads(x, num_heads, head_dim):
    b, t, _ = x.shape
    x = x.reshape(b, t, num_heads, head_dim)
    x = jnp.transpose(x, (0, 2, 1, 3))
    return x.reshape(b * num_heads, t, head_dim)


def reference_forward(params, query, key, value, pos_encoding,
                      *, num_heads, head_dim, attn_span):
    b, m, h = query.shape
    hp = "highest"  # accurate ground truth (full-precision matmul passes)
    lin = lambda x, w: jnp.einsum("bth,oh->bto", x, w, precision=hp)
    q = _split_heads(lin(query, params["wq"]), num_heads, head_dim)
    k = _split_heads(lin(key, params["wk"]), num_heads, head_dim)
    v = _split_heads(lin(value, params["wv"]), num_heads, head_dim)

    full = jnp.einsum("bmd,bld->bml", q, k, precision=hp)            # (BK, M, L)
    idx = jnp.arange(m)[:, None] + jnp.arange(attn_span)[None, :]    # (M, S)
    band = jnp.take_along_axis(
        full, jnp.broadcast_to(idx[None], (q.shape[0], m, attn_span)), axis=-1)
    attn_pos = jnp.einsum("bmd,ds->bms", q, pos_encoding, precision=hp)
    attn = jax.nn.softmax((band + attn_pos) / math.sqrt(head_dim), axis=-1)

    out = jnp.zeros_like(q)
    for s in range(attn_span):
        out = out + attn[:, :, s:s + 1] * v[:, s:s + m, :]

    out = out.reshape(b, num_heads, m, head_dim)
    out = jnp.transpose(out, (0, 2, 1, 3)).reshape(b, m, h)
    return lin(out, params["wo"])


# ---------------------------------------------------------------------------
# Demo
# ---------------------------------------------------------------------------

if __name__ == "__main__":
    hidden_size = 32
    num_heads = 4
    head_dim = hidden_size // num_heads
    attn_span = 8
    B, M = 2, 8
    L = M + attn_span   # key/value sequence length implied by _unskew/_skew

    key0 = jax.random.PRNGKey(0)
    ks = jax.random.split(key0, 8)
    scale = 1.0 / math.sqrt(hidden_size)
    params = {
        "wq": jax.random.normal(ks[0], (hidden_size, hidden_size), jnp.float32) * scale,
        "wk": jax.random.normal(ks[1], (hidden_size, hidden_size), jnp.float32) * scale,
        "wv": jax.random.normal(ks[2], (hidden_size, hidden_size), jnp.float32) * scale,
        "wo": jax.random.normal(ks[3], (hidden_size, hidden_size), jnp.float32) * scale,
    }
    query = jax.random.normal(ks[4], (B, M, hidden_size), jnp.float32)
    key_in = jax.random.normal(ks[5], (B, L, hidden_size), jnp.float32)
    value = jax.random.normal(ks[6], (B, L, hidden_size), jnp.float32)
    pos_encoding = jax.random.normal(ks[7], (head_dim, attn_span), jnp.float32)

    out = multi_head_seq_attention(
        params, query, key_in, value, pos_encoding,
        num_heads=num_heads, head_dim=head_dim, attn_span=attn_span)
    out = jax.block_until_ready(out)
    assert out.shape == (B, M, hidden_size)

    ref = reference_forward(
        params, query, key_in, value, pos_encoding,
        num_heads=num_heads, head_dim=head_dim, attn_span=attn_span)
    max_err = float(jnp.max(jnp.abs(out - ref)))
    ref_scale = max(1.0, float(jnp.max(jnp.abs(ref))))
    # Tolerance accommodates default-precision (bf16-pass) MXU matmuls in the
    # kernel against the full-precision reference.
    assert max_err <= 2e-2 * ref_scale, (
        f"mismatch vs reference (max abs err {max_err}, ref scale {ref_scale})")

    print("KERNEL_OK")
</pallas_src>

<mosaic_0001>
module attributes {stable_mosaic.version = 11 : i64} {
  func.func @_linear_resident_kernel(%arg0: i32, %arg1: memref<16x32xf32, #tpu.memory_space<vmem>>, %arg2: memref<32x32xf32, #tpu.memory_space<vmem>>, %arg3: memref<16x32xf32, #tpu.memory_space<vmem>>) attributes {dimension_semantics = [#tpu.dimension_semantics<parallel>], iteration_bounds = array<i64: 1>, scalar_prefetch = 0 : i64, scratch_operands = 0 : i64, tpu.core_type = #tpu.core_type<tc>, window_params = [{transform_indices = @transform_0, window_bounds = array<i64: 16, 32>}, {pipeline_mode = #tpu.pipeline_mode<synchronous>, transform_indices = @transform_1, window_bounds = array<i64: 32, 32>}, {transform_indices = @transform_2, window_bounds = array<i64: 16, 32>}]} {
    %c0 = arith.constant 0 : index
    %c0_0 = arith.constant 0 : index
    %0 = vector.load %arg1[%c0, %c0_0] : memref<16x32xf32, #tpu.memory_space<vmem>>, vector<16x32xf32>
    %c0_1 = arith.constant 0 : index
    %c0_2 = arith.constant 0 : index
    %1 = vector.load %arg2[%c0_1, %c0_2] : memref<32x32xf32, #tpu.memory_space<vmem>>, vector<32x32xf32>
    %cst = arith.constant dense<0.000000e+00> : vector<16x32xf32>
    %2 = tpu.matmul %0, %1, %cst {dimension_numbers = #tpu.dot_dimension_numbers<[1], [0], [0], [1], [0, 0, 1, 1], [], []>} : vector<16x32xf32>, vector<32x32xf32>, vector<16x32xf32> -> vector<16x32xf32>
    %c0_3 = arith.constant 0 : index
    %c0_4 = arith.constant 0 : index
    %3 = vector.load %arg3[%c0_3, %c0_4] : memref<16x32xf32, #tpu.memory_space<vmem>>, vector<16x32xf32>
    tpu.vector_store %arg3[%c0_3, %c0_4], %2 {strides = array<i32>} : memref<16x32xf32, #tpu.memory_space<vmem>>, vector<16x32xf32>,
    return
  }
  func.func @transform_0(%arg0: i32) -> (i32, i32) {
    %c0_i32 = arith.constant 0 : i32
    %c0_i32_0 = arith.constant 0 : i32
    return %arg0, %c0_i32 : i32, i32
  }
  func.func @transform_1(%arg0: i32) -> (i32, i32) {
    %c0_i32 = arith.constant 0 : i32
    %c0_i32_0 = arith.constant 0 : i32
    %c0_i32_1 = arith.constant 0 : i32
    return %c0_i32, %c0_i32_0 : i32, i32
  }
  func.func @transform_2(%arg0: i32) -> (i32, i32) {
    %c0_i32 = arith.constant 0 : i32
    %c0_i32_0 = arith.constant 0 : i32
    return %arg0, %c0_i32 : i32, i32
  }
}

</mosaic_0001>

<bundles_post_ra>
// kernel: tpu_custom_call.1
= control target key start
LH: loop header
LB: loop body
LE: loop exit
PB: predicated region body
PF: predicated region fallthrough
CT: control target
= control target key end

     0   :  { %7 = vsyncpa [#allocation3], 0  ;;  %s321_s0 = inlined_call_operand.hbm [shape: f32[16,32], index: 0, kind: input, shape index: {}]   ;;  %s322_s1 = inlined_call_operand.hbm [shape: f32[32,32], index: 1, kind: input, shape index: {}]   ;;  %s323_s2 = inlined_call_operand.hbm [shape: f32[16,32], index: 2, kind: output, shape index: {}]  }
   0x1   :  { %8 = vsyncpa [#allocation6], 0 }
   0x2   :  { %9 = vsyncpa [#allocation4], 0  ;;  %s252_s9 = smov [#allocation2]   ;;  %s180_s13 = scalar_lea.hbm %s321_s0, 256 }
   0x3   :  { %s15_s10 = sshll.u32 %s252_s9, 4  ;;  %p181_p0 = scmp.ne.s32.totalorder %s321_s0, %s180_s13  ;;  %s16_s10 = int_to_ptr.vmem [resolvable:$true] %s15_s10 }
   0x4   :  { %p184_p1 = scmp.lt.u32.totalorder %s180_s13, %s321_s0 }
   0x6   :  { %p186_p2 = pnand %p184_p1, %p181_p0 }
   0x8   :  { %189 = shalt.err (!%p186_p2)
}
   0x9   :  { %s190_s18 = scalar_lea.vmem %s16_s10, 256  ;;  %p195_p4 = scmp.lt.s32.totalorder %s16_s10, %s16_s10 }
   0xa   :  { %p191_p3 = scmp.ne.s32.totalorder %s16_s10, %s190_s18  ;;  %p196_p5 = scmp.lt.s32.totalorder %s190_s18, %s190_s18 }
   0xc   :  { %p197_p6 = por %p196_p5, %p195_p4 }
   0xe   :  { %p198_p7 = pnand %p197_p6, %p191_p3 }
  0x10   :  { %201 = shalt.err (!%p198_p7)
}
  0x11   :  { %s253_s19 = smov 128   ;;  %s254_s20 = smov 8  }
  0x12   :  { %21 = dma.hbm_to_vmem [thread:$0]  %s321_s0, 256, %s16_s10, [#allocation3], %s253_s19, %s253_s19, %s254_s20  }
  0x13   :  { %s255_s23 = smov [#allocation5]   ;;  %s202_s27 = scalar_lea.hbm %s322_s1, 512 }
  0x14   :  { %s27_s24 = sshll.u32 %s255_s23, 4  ;;  %p203_p8 = scmp.ne.s32.totalorder %s322_s1, %s202_s27  ;;  %s28_s24 = int_to_ptr.vmem [resolvable:$true] %s27_s24 }
  0x15   :  { %p206_p9 = scmp.lt.u32.totalorder %s202_s27, %s322_s1 }
  0x17   :  { %p208_p10 = pnand %p206_p9, %p203_p8 }
  0x19   :  { %211 = shalt.err (!%p208_p10)
}
  0x1a   :  { %s212_s4 = scalar_lea.vmem %s28_s24, 512  ;;  %p217_p12 = scmp.lt.s32.totalorder %s28_s24, %s28_s24 }
  0x1b   :  { %p213_p11 = scmp.ne.s32.totalorder %s28_s24, %s212_s4  ;;  %p218_p13 = scmp.lt.s32.totalorder %s212_s4, %s212_s4 }
  0x1d   :  { %p219_p0 = por %p218_p13, %p217_p12 }
  0x1f   :  { %p220_p1 = pnand %p219_p0, %p213_p11 }
  0x21   :  { %223 = shalt.err (!%p220_p1)
}
  0x22   :  { %33 = dma.hbm_to_vmem [thread:$0]  %s322_s1, 512, %s28_s24, [#allocation6], %s253_s19, %s253_s19, %s254_s20  }
  0x23   :  { %246 = dma.done.wait [#allocation3], 256  }
  0x24   :  { %247 = vsyncadd [#allocation3], 4294967040 }
  0x25   :  { %248 = dma.done.wait [#allocation6], 512  }
  0x26   :  { %249 = vsyncadd [#allocation6], 4294966784  ;;  %vm46_vm0 = vcmask 261120   ;;  %v42_v0 = vld [vmem:[#allocation5] sm:$0xff]  ;;  %v43_v1 = vld [vmem:[#allocation5 + $0x8] sm:$0xff]  ;;  %s256_s1 = smov [#allocation7]  }
  0x27   :  { %v44_v2 = vld [vmem:[#allocation5 + $0x10] sm:$0xff]  ;;  %v167_v3 = vpack.c.bf16 %v43_v1, %v42_v0  ;;  %v45_v4 = vld [vmem:[#allocation5 + $0x18] sm:$0xff]  ;;  %s135_s6 = sshll.u32 %s256_s1, 4  ;;  %s136_s6 = int_to_ptr.vmem [resolvable:$true] %s135_s6 }
  0x28   :  { %v40_v5 = vld [vmem:[#allocation2] sm:$0xff]  ;;  %v171_v6 = vpack.c.bf16 %v45_v4, %v44_v2  ;;  %v41_v7 = vld [vmem:[#allocation2 + $0x8] sm:$0xff]  ;;  %s224_s7 = scalar_lea.vmem %s136_s6, 256  ;;  %p229_p3 = scmp.lt.s32.totalorder %s136_s6, %s136_s6 }
  0x29   :  { %164 = vmatprep.mubr.msk.f32.mxu0 %vm46_vm0, %v40_v5  ;;  %168 = vmatprep.subr.bf16.mxu0 %v167_v3  ;;  %p225_p2 = scmp.ne.s32.totalorder %s136_s6, %s224_s7  ;;  %p230_p4 = scmp.lt.s32.totalorder %s224_s7, %s224_s7 }
  0x2a   :  { %170 = vmatpush3.bf16.msra.mxu0 %v167_v3 }
  0x2b   :  { %172 = vmatprep.subr.bf16.mxu0 %v171_v6  ;;  %p231_p5 = por %p230_p4, %p229_p3 }
  0x2d   :  { %p232_p6 = pnand %p231_p5, %p225_p2 }
  0x2e   :  { %174 = vmatpush3.bf16.msra.mxu0 %v171_v6 }
  0x31   :  { %165 = vmatmul.mubr.msk.f32.vlgmr.msra.gmra.mrb[0].mxu0 %vm46_vm0, %v41_v7 }
 0x104   :  { %v166_v8 = vpop.f32.mrb[0].mxu0 }
 0x105   :  { %129 = vst.msk [vmem:[#allocation7 + $0x8] sm:$0xff] %vm46_vm0, %v166_v8  ;;  %v119_v9 = vpop.f32.mrb[1].mxu0 }
 0x106   :  { %128 = vst.msk [vmem:[#allocation7] sm:$0xff] %vm46_vm0, %v119_v9 }
 0x107   :  { %235 = shalt.err (!%p232_p6)
}
 0x108   :  { %s236_s10 = scalar_lea.hbm %s323_s2, 256 }
 0x109   :  { %p237_p7 = scmp.ne.s32.totalorder %s323_s2, %s236_s10  ;;  %p240_p8 = scmp.lt.u32.totalorder %s236_s10, %s323_s2 }
 0x10b   :  { %p242_p9 = pnand %p240_p8, %p237_p7 }
 0x10d   :  { %245 = shalt.err (!%p242_p9)
}
 0x10e   :  { %141 = dma.vmem_to_hbm [thread:$0]  %s136_s6, 256, %s323_s2, [#allocation4], %s253_s19, %s253_s19, %s254_s20  }
 0x10f   :  { %250 = dma.done.wait [#allocation4], 256  }
 0x110   :  { %251 = vsyncadd [#allocation4], 4294967040 }
 0x111   :  { %145 = vsyncpa [#allocation3], 1 }
 0x112   :  { %146 = vsyncpa [#allocation6], 1 }
 0x113   :  { %147 = vsyncpa [#allocation4], 1 }

</bundles_post_ra>
